<compile_context>
chip_gen: v7x
topology: tpu7x:2x2x1
jax: 0.10.0
libtpu: 0.0.40
codegen_flags: <defaults>
</compile_context>

<pallas_src>
import jax
import jax.numpy as jnp
from jax.experimental import pallas as pl
from jax.experimental.pallas import tpu as pltpu


def _residual_kernel(x_ref, w1_ref, w2_ref, o_ref):
    # x_ref:  (Cin, L)    one batch element (leading N dim squeezed), NCL layout
    # w1_ref: (3H, Cin)   stacked k=3 taps: rows [0:H)=tap@x[l-1], [H:2H)=x[l],
    #                     [2H:3H)=x[l+1], each row block in (H, Cin) matmul form
    # w2_ref: (Cout, H)   k=1 conv weights
    # o_ref:  (Cout, L)
    _, L = x_ref.shape
    H = w2_ref.shape[1]

    x = x_ref[...]                                  # (Cin, L)
    h = jnp.maximum(x, 0.0)                         # first ReLU

    # All three taps in a single MXU matmul: (3H, Cin) @ (Cin, L) -> (3H, L).
    a = jnp.dot(w1_ref[...], h, preferred_element_type=jnp.float32)
    a_l = a[0 * H:1 * H]                            # tap applied to x[l-1]
    a_m = a[1 * H:2 * H]                            # tap applied to x[l]
    a_r = a[2 * H:3 * H]                            # tap applied to x[l+1]

    # 'same' k=3 conv: tap0's contribution lands at l+1, tap2's at l-1.
    # Shift on the XLU with pltpu.roll; zero the wrapped boundary column
    # (it corresponds to the zero padding in the reference conv).
    lane = jax.lax.broadcasted_iota(jnp.int32, (H, L), 1)
    left = jnp.where(lane == 0, 0.0, pltpu.roll(a_l, shift=1, axis=1))
    right = jnp.where(lane == L - 1, 0.0, pltpu.roll(a_r, shift=L - 1, axis=1))

    y1 = jnp.maximum(left + a_m + right, 0.0)       # second ReLU, (H, L)
    y2 = jnp.dot(w2_ref[...], y1, preferred_element_type=jnp.float32)  # (Cout, L)

    o_ref[...] = (x + y2).astype(o_ref.dtype)       # residual add


def residual_forward(x_ncl, w1_torch, w2_torch):
    """x_ncl: (N, C, L) float32, PyTorch NCL layout (used as-is, no transpose).
    w1_torch: (H, Cin, 3)   -- nn.Conv1d(in_channels, num_residual_hiddens, 3)
    w2_torch: (Cout, H, 1)  -- nn.Conv1d(num_residual_hiddens, num_hiddens, 1)
    Returns (N, C, L)."""
    N, Cin, L = x_ncl.shape
    H = w1_torch.shape[0]
    Cout = w2_torch.shape[0]
    assert Cout == Cin, "residual add requires num_hiddens == in_channels"
    assert H % 8 == 0, "num_residual_hiddens should be a multiple of 8 (sublane)"

    # Tiny weight re-layouts only (activations stay in NCL):
    #   (H, Cin, 3) -> (3, H, Cin) -> stacked (3H, Cin)
    w1 = jnp.transpose(w1_torch, (2, 0, 1)).reshape(3 * H, Cin)
    w2 = w2_torch[:, :, 0]                          # (Cout, H)

    # Explicit VMEM budget: double-buffered in/out activation tiles + weights
    # (also double-buffered by the pipeline) + f32 intermediates, with margin.
    elt = jnp.dtype(x_ncl.dtype).itemsize
    tile_bytes = (Cin + Cout) * L * elt             # one in + one out tile
    w_bytes = (3 * H * Cin + Cout * H) * elt
    interm_bytes = (3 * H + H) * L * 4              # a (3H,L) + y1 (H,L) in f32
    vmem_need = 2 * tile_bytes + 2 * w_bytes + interm_bytes
    vmem_limit = int(min(max(4 * vmem_need, 4 << 20), 64 << 20))

    # One batch element per grid step: >=2 steps for pipelining / v7x's 2 TCs,
    # per-step tiles are a few MiB at realistic VQ-VAE shapes (fits v7x VMEM).
    grid = (N,)
    return pl.pallas_call(
        _residual_kernel,
        out_shape=jax.ShapeDtypeStruct((N, Cout, L), x_ncl.dtype),
        grid_spec=pltpu.PrefetchScalarGridSpec(
            num_scalar_prefetch=0,
            grid=grid,
            in_specs=[
                pl.BlockSpec((pl.Squeezed(), Cin, L), lambda i: (i, 0, 0)),
                pl.BlockSpec((3 * H, Cin), lambda i: (0, 0)),   # DMA'd once
                pl.BlockSpec((Cout, H), lambda i: (0, 0)),      # DMA'd once
            ],
            out_specs=pl.BlockSpec((pl.Squeezed(), Cout, L), lambda i: (i, 0, 0)),
        ),
        compiler_params=pltpu.CompilerParams(
            dimension_semantics=("parallel",),
            vmem_limit_bytes=vmem_limit),
    )(x_ncl, w1, w2)


def _reference(x_ncl, w1_torch, w2_torch):
    """Plain-JAX reference matching PyTorch Conv1d semantics."""
    h = jnp.maximum(x_ncl, 0.0)                                  # (N, Cin, L)
    y1 = jax.lax.conv_general_dilated(
        h, w1_torch, window_strides=(1,), padding=((1, 1),),
        dimension_numbers=("NCH", "OIH", "NCH"))
    y1 = jnp.maximum(y1, 0.0)
    y2 = jax.lax.conv_general_dilated(
        y1, w2_torch, window_strides=(1,), padding=((0, 0),),
        dimension_numbers=("NCH", "OIH", "NCH"))
    return x_ncl + y2


if __name__ == "__main__":
    # Residual(in_channels=16, num_hiddens=16, num_residual_hiddens=8)
    N, Cin, L = 2, 16, 128    # L multiple of 128 -> lane-dense blocks
    H = 8                     # num_residual_hiddens
    Cout = Cin                # num_hiddens == in_channels for the residual add

    key = jax.random.PRNGKey(0)
    kx, k1, k2 = jax.random.split(key, 3)
    x = jax.random.normal(kx, (N, Cin, L), dtype=jnp.float32)
    w1 = jax.random.normal(k1, (H, Cin, 3), dtype=jnp.float32) * 0.1
    w2 = jax.random.normal(k2, (Cout, H, 1), dtype=jnp.float32) * 0.1

    out = residual_forward(x, w1, w2)
    out = jax.block_until_ready(out)

    ref = _reference(x, w1, w2)
    assert out.shape == (N, Cin, L)
    assert jnp.allclose(out, ref, atol=1e-4, rtol=1e-4), "mismatch vs reference"

    print("KERNEL_OK")
</pallas_src>

<mosaic_0001>
module attributes {stable_mosaic.version = 11 : i64} {
  func.func @_residual_kernel(%arg0: i32, %arg1: memref<1x16x128xf32, #tpu.memory_space<vmem>>, %arg2: memref<24x16xf32, #tpu.memory_space<vmem>>, %arg3: memref<16x8xf32, #tpu.memory_space<vmem>>, %arg4: memref<1x16x128xf32, #tpu.memory_space<vmem>>) attributes {dimension_semantics = [#tpu.dimension_semantics<parallel>], iteration_bounds = array<i64: 2>, scalar_prefetch = 0 : i64, scratch_operands = 0 : i64, tpu.core_type = #tpu.core_type<tc>, window_params = [{transform_indices = @transform_0, window_bounds = array<i64: 1, 16, 128>}, {pipeline_mode = #tpu.pipeline_mode<synchronous>, transform_indices = @transform_1, window_bounds = array<i64: 24, 16>}, {pipeline_mode = #tpu.pipeline_mode<synchronous>, transform_indices = @transform_2, window_bounds = array<i64: 16, 8>}, {transform_indices = @transform_3, window_bounds = array<i64: 1, 16, 128>}]} {
    %c0 = arith.constant 0 : index
    %c0_0 = arith.constant 0 : index
    %c0_1 = arith.constant 0 : index
    %0 = vector.load %arg1[%c0, %c0_0, %c0_1] : memref<1x16x128xf32, #tpu.memory_space<vmem>>, vector<1x16x128xf32>
    %1 = vector.shape_cast %0 : vector<1x16x128xf32> to vector<16x128xf32>
    %cst = arith.constant 0.000000e+00 : f32
    %2 = vector.broadcast %cst : f32 to vector<16x128xf32>
    %3 = arith.maximumf %1, %2 : vector<16x128xf32>
    %c0_2 = arith.constant 0 : index
    %c0_3 = arith.constant 0 : index
    %4 = vector.load %arg2[%c0_2, %c0_3] : memref<24x16xf32, #tpu.memory_space<vmem>>, vector<24x16xf32>
    %cst_4 = arith.constant dense<0.000000e+00> : vector<24x128xf32>
    %5 = tpu.matmul %4, %3, %cst_4 {dimension_numbers = #tpu.dot_dimension_numbers<[1], [0], [0], [1], [0, 0, 1, 1], [], []>} : vector<24x16xf32>, vector<16x128xf32>, vector<24x128xf32> -> vector<24x128xf32>
    %6 = vector.extract_strided_slice %5 {offsets = [0, 0], sizes = [8, 128], strides = [1, 1]} : vector<24x128xf32> to vector<8x128xf32>
    %7 = vector.extract_strided_slice %5 {offsets = [8, 0], sizes = [8, 128], strides = [1, 1]} : vector<24x128xf32> to vector<8x128xf32>
    %8 = vector.extract_strided_slice %5 {offsets = [16, 0], sizes = [8, 128], strides = [1, 1]} : vector<24x128xf32> to vector<8x128xf32>
    %9 = tpu.iota {dimensions = array<i32: 1>} : vector<8x128xi32>
    %c0_i32 = arith.constant 0 : i32
    %10 = vector.broadcast %c0_i32 : i32 to vector<8x128xi32>
    %11 = arith.cmpi eq, %9, %10 : vector<8x128xi32>
    %c1_i32 = arith.constant 1 : i32
    %12 = tpu.dynamic_rotate %6 by %c1_i32 dim 1 : vector<8x128xf32>, i32 -> vector<8x128xf32>
    %cst_5 = arith.constant 0.000000e+00 : f32
    %13 = vector.broadcast %cst_5 : f32 to vector<8x128xf32>
    %14 = arith.select %11, %13, %12 : vector<8x128xi1>, vector<8x128xf32>
    %c127_i32 = arith.constant 127 : i32
    %15 = vector.broadcast %c127_i32 : i32 to vector<8x128xi32>
    %16 = arith.cmpi eq, %9, %15 : vector<8x128xi32>
    %c127_i32_6 = arith.constant 127 : i32
    %17 = tpu.dynamic_rotate %8 by %c127_i32_6 dim 1 : vector<8x128xf32>, i32 -> vector<8x128xf32>
    %cst_7 = arith.constant 0.000000e+00 : f32
    %18 = vector.broadcast %cst_7 : f32 to vector<8x128xf32>
    %19 = arith.select %16, %18, %17 : vector<8x128xi1>, vector<8x128xf32>
    %20 = arith.addf %14, %7 : vector<8x128xf32>
    %21 = arith.addf %20, %19 : vector<8x128xf32>
    %cst_8 = arith.constant 0.000000e+00 : f32
    %22 = vector.broadcast %cst_8 : f32 to vector<8x128xf32>
    %23 = arith.maximumf %21, %22 : vector<8x128xf32>
    %c0_9 = arith.constant 0 : index
    %c0_10 = arith.constant 0 : index
    %24 = vector.load %arg3[%c0_9, %c0_10] : memref<16x8xf32, #tpu.memory_space<vmem>>, vector<16x8xf32>
    %cst_11 = arith.constant dense<0.000000e+00> : vector<16x128xf32>
    %25 = tpu.matmul %24, %23, %cst_11 {dimension_numbers = #tpu.dot_dimension_numbers<[1], [0], [0], [1], [0, 0, 1, 1], [], []>} : vector<16x8xf32>, vector<8x128xf32>, vector<16x128xf32> -> vector<16x128xf32>
    %26 = arith.addf %1, %25 : vector<16x128xf32>
    %c0_12 = arith.constant 0 : index
    %c0_13 = arith.constant 0 : index
    %c0_14 = arith.constant 0 : index
    %27 = vector.load %arg4[%c0_12, %c0_13, %c0_14] : memref<1x16x128xf32, #tpu.memory_space<vmem>>, vector<1x16x128xf32>
    %28 = vector.shape_cast %27 : vector<1x16x128xf32> to vector<16x128xf32>
    %29 = vector.shape_cast %26 : vector<16x128xf32> to vector<1x16x128xf32>
    tpu.vector_store %arg4[%c0_12, %c0_13, %c0_14], %29 {strides = array<i32>} : memref<1x16x128xf32, #tpu.memory_space<vmem>>, vector<1x16x128xf32>,
    return
  }
  func.func @transform_0(%arg0: i32) -> (i32, i32, i32) {
    %c0_i32 = arith.constant 0 : i32
    %c0_i32_0 = arith.constant 0 : i32
    %c0_i32_1 = arith.constant 0 : i32
    return %arg0, %c0_i32, %c0_i32_0 : i32, i32, i32
  }
  func.func @transform_1(%arg0: i32) -> (i32, i32) {
    %c0_i32 = arith.constant 0 : i32
    %c0_i32_0 = arith.constant 0 : i32
    %c0_i32_1 = arith.constant 0 : i32
    return %c0_i32, %c0_i32_0 : i32, i32
  }
  func.func @transform_2(%arg0: i32) -> (i32, i32) {
    %c0_i32 = arith.constant 0 : i32
    %c0_i32_0 = arith.constant 0 : i32
    %c0_i32_1 = arith.constant 0 : i32
    return %c0_i32, %c0_i32_0 : i32, i32
  }
  func.func @transform_3(%arg0: i32) -> (i32, i32, i32) {
    %c0_i32 = arith.constant 0 : i32
    %c0_i32_0 = arith.constant 0 : i32
    %c0_i32_1 = arith.constant 0 : i32
    return %arg0, %c0_i32, %c0_i32_0 : i32, i32, i32
  }
}

</mosaic_0001>

<bundles_post_ra>
// kernel: tpu_custom_call.1
= control target key start
LH: loop header
LB: loop body
LE: loop exit
PB: predicated region body
PF: predicated region fallthrough
CT: control target
= control target key end

     0   :  { %8 = vsyncpa [#allocation3], 0  ;;  %s754_s0 = inlined_call_operand.vmem [shape: f32[2,16,128], index: 0, kind: input, shape index: {}]   ;;  %s755_s1 = inlined_call_operand.vmem [shape: f32[24,16], index: 1, kind: input, shape index: {}]   ;;  %s756_s2 = inlined_call_operand.vmem [shape: f32[16,8], index: 2, kind: input, shape index: {}]   ;;  %s757_s3 = inlined_call_operand.hbm [shape: f32[2,16,128], index: 3, kind: output, shape index: {}]  }
   0x1   :  { %10 = vsyncpa [#allocation3 + $0x1], 0  ;;  %s631_s12 = smov 0   ;;  %s633_s13 = smov 0  }
   0x2   :  { %s635_s14 = smov 0   ;;  %s637_s15 = smov 0  }
   0x3 LB: > { %s652_s16 = sadd.s32 4294967295, %s601_s15   ;;  %s443_s17 = sadd.s32 4294967294, %s601_s15   ;;  %s601_s15 = sphi %s637_s15, %s763_s15   ;;  %s597_s14 = sphi %s635_s14, %s762_s14   ;;  %s593_s13 = sphi %s633_s13, %s761_s13   ;;  %s589_s12 = sphi %s631_s12, %s760_s12  }
   0x4   : > { %s656_s18 = sadd.s32 1, %s601_s15   ;;  %s91_s19 = sadd.s32 1, %s597_s14 }
   0x5   : > { %s88_s20 = ssub.s32 %s601_s15, %s656_s18  ;;  %p101_p0 = scmp.ne.s32.totalorder %s597_s14, %s593_s13 }
   0x6   : > { %p89_p1 = scmp.eq.s32.totalorder %s88_s20, 0  ;;  %p102_p2 = scmp.eq.s32.totalorder %s652_s16, 1 }
   0x7   : > { %p107_p3 = scmp.ne.s32.totalorder %s593_s13, %s589_s12  ;;  %p108_p4 = scmp.eq.s32.totalorder %s443_s17, 1 }
   0x8   : > { %s667_s21 = scalar_select %p89_p1, %s597_s14, %s91_s19  }
   0x9   : > { %p669_p5 = por %p102_p2, %p101_p0  ;;  %p673_p6 = por %p108_p4, %p107_p3 }
   0xa   : > { %p446_p7 = scmp.ge.s32.totalorder %s601_s15, 1  ;;  %p140_p8 = scmp.lt.s32.totalorder %s601_s15, 3 }
   0xc   : > { %p141_p9 = pnand %p446_p7, %p140_p8 }
   0xd   : > { %p164_p10 = scmp.lt.s32.totalorder (!%p141_p9), %s652_s16, 1  ;;  %v603_v0 = vmov (!%p141_p9), 0.0|0.0   ;;  %vm604_vm0 = vmmov (!%p141_p9), 0   ;;  %v605_v1 = vmov (!%p141_p9), 0.0   ;;  %v173_v7 = vld [vmem:[%s755_s1] sm:$0xff] (!%p141_p9)  ;;  %vm176_vm1 = vcmask (!%p141_p9), 130048  }
   0xe   : > { %144 = sbr.rel (%p141_p9) target bundleno = 601 (0x259), region = 32  ;;  %488 = vmatprep.subr.bf16.mxu0 (!%p141_p9), %v603_v0  ;;  %491 = vmatprep.subr.bf16.mxu1 (!%p141_p9), %v603_v0  ;;  %v175_v8 = vld [vmem:[%s755_s1 + $0x10] sm:$0xff] (!%p141_p9)  ;;  %v174_v9 = vld [vmem:[%s755_s1 + $0x8] sm:$0xff] (!%p141_p9)  ;;  %v279_v10 = vld [vmem:[%s756_s2] sm:$0xff] (!%p141_p9)  ;;  %vm281_vm2 = vcmask (!%p141_p9), 64512   ;;  %s606_s10 = smov (!%p141_p9), 1   ;;  %v266_v17 = vlaneseq (!%p141_p9) }
   0xf   : > { %474 = vmatprep.mubr.msk.f32.mxu0 (!%p141_p9), %vm604_vm0, %v605_v1  ;;  %480 = vmatprep.mubr.msk.f32.mxu1 (!%p141_p9), %vm604_vm0, %v605_v1  ;;  %s607_s11 = smov (!%p141_p9), 127   ;;  %v280_v26 = vld [vmem:[%s756_s2 + $0x8] sm:$0xff] (!%p141_p9)  ;;  %s161_s20 = sand.u32 (!%p141_p9), 1, %s593_s13  }
  0x10   : > { %v267_v18 = vand.u32 (!%p141_p9), 127, %v266_v17  ;;  %s461_s27 = sshll.u32 (!%p141_p9), %s652_s16, 8  ;;  %s713_s4 = scalar_lea.sflag (!%p141_p9), [#allocation3], %s161_s20 }
  0x11   : > { %s711_s30 = scalar_lea.hbm (!%p141_p9), %s757_s3, %s461_s27 }
  0x12   : > { %vm268_vm3 = vcmp.eq.s32.totalorder (!%p141_p9), %v267_v18, 0  ;;  %vm272_vm4 = vcmp.eq.s32.totalorder (!%p141_p9), %v267_v18, 127 }
  0x15   : > { %s165_s24 = scalar_select %p164_p10, %s652_s16, 1 }
  0x16   : > { %s608_s16 = smov [#allocation2]  }
  0x17   : > { %s460_s25 = sshll.u32 %s165_s24, 4  ;;  %s447_s24 = sshll.u32 %s161_s20, 4 }
  0x18   : > { %s168_s28 = scalar_lea.vmem %s754_s0, %s460_s25  ;;  %s163_s25 = scalar_lea.vmem [#allocation2], %s447_s24 }
  0x19   : > { %v169_v2 = vld [vmem:[%s168_s28] sm:$0xff]  ;;  %v170_v3 = vld [vmem:[%s168_s28 + $0x8] sm:$0xff]  ;;  %s381_s26 = sshll.u32 %s163_s25, 4  ;;  %s543_s6 = sshll.u32 %s608_s16, 4  ;;  %s706_s26 = int_to_ptr.vmem [resolvable:$true] %s381_s26  ;;  %s544_s6 = int_to_ptr.vmem [resolvable:$false] %s543_s6 }
  0x1a   : > { %v171_v4 = vmax.f32 %v169_v2, 0.0  ;;  %v172_v5 = vmax.f32 %v170_v3, 0.0  ;;  %s539_s5 = scalar_lea.vmem %s706_s26, 256  ;;  %s545_s7 = scalar_lea.vmem %s544_s6, 512 }
  0x1b   : > { %p540_p11 = scmp.ne.s32.totalorder %s706_s26, %s539_s5  ;;  %p546_p0 = scmp.lt.s32.totalorder %s706_s26, %s544_s6 }
  0x1c   : > { %v489_v6 = vpack.c.bf16 %v172_v5, %v171_v4  ;;  %p547_p1 = scmp.lt.s32.totalorder %s545_s7, %s539_s5 }
  0x1d   : > { %p541_p12 = pnand %p540_p11, %p669_p5 }
  0x1e   : > { %490 = vmatpush3.bf16.msra.mxu0 %v489_v6  ;;  %492 = vmatpush3.bf16.msra.mxu1 %v489_v6  ;;  %p548_p2 = por %p547_p1, %p546_p0 }
  0x1f   : > { %p542_p13 = pneg %p541_p12 }
  0x21   : > { %475 = vmatmul.mubr.msk.f32.vlgmr.msra.gmra.mrb[0].mxu0 %vm176_vm1, %v173_v7  ;;  %481 = vmatmul.mubr.msk.f32.vlgmr.msra.gmra.mrb[0].mxu1 %vm176_vm1, %v175_v8  ;;  %p549_p3 = pnand %p548_p2, %p542_p13 }
  0x22   : > { %477 = vmatprep.mubr.msk.f32.mxu0 %vm604_vm0, %v605_v1  ;;  %485 = vmatprep.mubr.msk.f32.mxu1 %vm281_vm2, %v279_v10 }
  0x25   : > { %478 = vmatmul.mubr.msk.f32.gmra.mrb[2].mxu0 %vm176_vm1, %v174_v9 }
  0xf4   : > { %v252_v11 = vpop.f32.mrb[0].mxu0  ;;  %v262_v12 = vpop.f32.mrb[0].mxu1 }
  0xf5   : > { %269 = vrot.lane.b32.xlu0 %v252_v11, %s606_s10  ;;  %v476_v13 = vpop.f32.mrb[1].mxu0  ;;  %v482_v14 = vpop.f32.mrb[1].mxu1 }
  0xf8   : > { %v257_v15 = vpop.f32.mrb[2].mxu0 }
  0xf9   : > { %273 = vrot.lane.b32.xlu0 %v262_v12, %s607_s11  ;;  %v479_v16 = vpop.f32.mrb[3].mxu0 }
 0x167   : > { %v270_v19 = vpop.permute.xlu0 %269 }
 0x168   : > { %v271_v20 = vsel %vm268_vm3, 0.0, %v270_v19 }
 0x169   : > { %v276_v21 = vadd.f32 %v271_v20, %v257_v15 }
 0x16b   : > { %v274_v22 = vpop.permute.xlu0 %273 }
 0x16c   : > { %v275_v23 = vsel %vm272_vm4, 0.0, %v274_v22 }
 0x16d   : > { %v277_v24 = vadd.f32 %v276_v21, %v275_v23 }
 0x16f   : > { %v278_v25 = vmax.f32 %v277_v24, 0.0 }
 0x171   : > { %483 = vmatprep.subr.mxu1 %v278_v25 }
 0x172   : > { %484 = vmatpush3.msra.mxu1 %v278_v25 }
 0x173   : > { %486 = vmatmul.mubr.msk.f32.vlgmr.msra.gmra.mrb[2].mxu1 %vm281_vm2, %v280_v26 }
 0x246   : > { %v487_v27 = vpop.f32.mrb[2].mxu1 }
 0x247   : > { %v364_v28 = vadd.f32 %v487_v27, %v170_v3  ;;  %v354_v29 = vpop.f32.mrb[3].mxu1 }
 0x248   : > { %v363_v30 = vadd.f32 %v354_v29, %v169_v2 }
 0x249   : > { %366 = vst [vmem:[%s163_s25 + $0x8] sm:$0xff] %v364_v28 }
 0x24a   : > { %365 = vst [vmem:[%s163_s25] sm:$0xff] %v363_v30 }
 0x24b   : > { %552 = shalt.err (!%p549_p3)
}
 0x24c   : > { %s553_s8 = scalar_lea.hbm %s711_s30, 256  ;;  %s557_s11 = scalar_lea.hbm %s757_s3, 512 }
 0x24d   : > { %p554_p4 = scmp.ne.s32.totalorder %s711_s30, %s553_s8  ;;  %p558_p9 = scmp.lt.u32.totalorder %s711_s30, %s757_s3 }
 0x24e   : > { %p559_p10 = scmp.lt.u32.totalorder %s557_s11, %s553_s8  ;;  %p561_p12 = scmp.lt.u32.totalorder %s553_s8, %s711_s30 }
 0x24f   : > { %p555_p7 = pnand %p554_p4, %p669_p5 }
 0x250   : > { %p560_p11 = por %p559_p10, %p558_p9 }
 0x251   : > { %p556_p8 = pneg %p555_p7 }
 0x252   : > { %p562_p13 = por %p561_p12, %p560_p11 }
 0x254   : > { %p563_p0 = pnand %p562_p13, %p556_p8 }
 0x256   : > { %566 = shalt.err (!%p563_p0)
}
 0x257   : > { %s609_s20 = smov 128   ;;  %s610_s24 = smov 8  }
 0x258   : > { %493 = dma.vmem_to_hbm [thread:$0]  (%p669_p5), %s706_s26, 256, %s711_s30, %s713_s4, %s609_s20, %s609_s20, %s610_s24  }
 0x259 PF: > { %p499_p1 = scmp.ge.s32.totalorder %s601_s15, 2  ;;  %s396_s25 = sand.u32 1, %s589_s12  }
 0x25a   : > { %s397_s27 = scalar_lea.sflag [#allocation3], %s396_s25 }
 0x25b   : > { %p496_p2 = pnand %p499_p1, %p673_p6 }
 0x25d   : > { %584 = dma.done.wait (!%p496_p2), %s397_s27, 256  }
 0x25e   : > { %586 = vsyncadd (!%p496_p2), %s397_s27, 4294967040  ;;  %p13_p3 = scmp.ge.s32.totalorder %s656_s18, 4   ;;  %s760_s12 = smov %s593_s13 }
 0x25f   : > { %s761_s13 = smov %s597_s14  ;;  %s762_s14 = smov %s667_s21 }
 0x260   : > { %s763_s15 = smov %s656_s18  ;;  %15 = sbr.rel (!%p13_p3) target bundleno = 3 (0x3), region = 67 }
 0x267   :  { %402 = vsyncpa [#allocation3], 1 }
 0x268   :  { %404 = vsyncpa [#allocation3 + $0x1], 1 }

</bundles_post_ra>
